<compile_context>
chip_gen: v7x
topology: tpu7x:2x2x1
jax: 0.10.0
libtpu: 0.0.40
codegen_flags: <defaults>
</compile_context>

<pallas_src>
import functools

import jax
import jax.numpy as jnp
from jax import lax
from jax.experimental import pallas as pl
from jax.experimental.pallas import tpu as pltpu

_BN_EPS = 1e-5
_LANES = 128


def _encoder_kernel(xs_ref, w_ref, shift_ref, o_ref, *, pool):
    """One batch element per grid step.

    xs_ref:    (1, P, K)        bf16 im2col rows, K = 9*Cin.  When `pool`, the
                                rows are phase-ordered [ph00 | ph01 | ph10 | ph11],
                                each block of P//4 rows in pooled raster order.
    w_ref:     (K, Cpad)        bf16 weights with the BN scale folded in.
    shift_ref: (1, Cpad)        f32 fused conv-bias + BN shift.
    o_ref:     (1, P_out, Cpad) f32, P_out = P//4 if pool else P.
    """
    # Single packed-K matmul on the MXU, f32 accumulation.
    y = jnp.dot(xs_ref[0], w_ref[...], preferred_element_type=jnp.float32)
    y = jnp.maximum(y + shift_ref[...], 0.0)          # fused bias/BN shift + ReLU
    if pool:
        p4 = o_ref.shape[1]
        # 2x2 max-pool == elementwise max over the 4 phase blocks (static,
        # contiguous, 8-aligned row slices -> no strided access, no reshape).
        y = jnp.maximum(jnp.maximum(y[0 * p4:1 * p4], y[1 * p4:2 * p4]),
                        jnp.maximum(y[2 * p4:3 * p4], y[3 * p4:4 * p4]))
    o_ref[0] = y.astype(o_ref.dtype)


def _encoder_conv(xs, w, shift, pool):
    N, P, K = xs.shape
    cpad = w.shape[1]
    p_out = P // 4 if pool else P
    kernel = functools.partial(_encoder_kernel, pool=pool)
    return pl.pallas_call(
        kernel,
        out_shape=jax.ShapeDtypeStruct((N, p_out, cpad), jnp.float32),
        grid_spec=pltpu.PrefetchScalarGridSpec(
            num_scalar_prefetch=0,
            grid=(N,),
            in_specs=[
                pl.BlockSpec((1, P, K), lambda n: (n, 0, 0)),
                pl.BlockSpec((K, cpad), lambda n: (0, 0)),
                pl.BlockSpec((1, cpad), lambda n: (0, 0)),
            ],
            out_specs=pl.BlockSpec((1, p_out, cpad), lambda n: (n, 0, 0)),
        ),
        compiler_params=pltpu.CompilerParams(
            dimension_semantics=("parallel",),
            vmem_limit_bytes=32 * 1024 * 1024,   # safe on v5e/v6e/v7x for these blocks
        ),
    )(xs, w, shift)


class EncoderLayerPallas:
    """JAX/Pallas port of DomainBed's EncoderLayer (BatchNorm in eval mode)."""

    def __init__(self, in_channels, out_channels, downsample_method=None, *, key):
        assert downsample_method in {None, "conv", "pool"}
        self.in_channels = in_channels
        self.out_channels = out_channels
        self.downsample_method = downsample_method
        self.stride = 2 if downsample_method == "conv" else 1
        self.pool = downsample_method == "pool"

        kw, kb, kg, kbt, km, kv = jax.random.split(key, 6)
        fan_in = in_channels * 9
        wscale = 1.0 / jnp.sqrt(fan_in)
        # PyTorch Conv2d weight layout: (Cout, Cin, kH, kW)
        self.w_c = wscale * jax.random.normal(
            kw, (out_channels, in_channels, 3, 3), jnp.float32)
        self.conv_bias = wscale * jax.random.normal(kb, (out_channels,), jnp.float32)
        # BatchNorm2d parameters / running statistics (eval-mode semantics).
        self.gamma = 1.0 + 0.1 * jax.random.normal(kg, (out_channels,), jnp.float32)
        self.beta = 0.1 * jax.random.normal(kbt, (out_channels,), jnp.float32)
        self.running_mean = 0.1 * jax.random.normal(km, (out_channels,), jnp.float32)
        self.running_var = jnp.exp(0.1 * jax.random.normal(kv, (out_channels,), jnp.float32))

        # Fold conv bias + eval-mode BN into per-channel scale/shift, then fold
        # the scale into the weights so the kernel epilogue is just `+ shift`.
        bn_scale = self.gamma / jnp.sqrt(self.running_var + _BN_EPS)
        shift = (self.conv_bias - self.running_mean) * bn_scale + self.beta

        # Tap-major packed contraction dim: (kh, kw, Cin) -> K = 9*Cin rows.
        w9 = jnp.transpose(self.w_c, (2, 3, 1, 0)).reshape(9 * in_channels, out_channels)
        w9 = w9 * bn_scale[None, :]

        # Pad output channels to a multiple of 128 (lane-dense output stores).
        self.cpad = max(_LANES, -(-out_channels // _LANES) * _LANES)
        self.w_pad = (jnp.zeros((9 * in_channels, self.cpad), jnp.float32)
                      .at[:, :out_channels].set(w9)).astype(jnp.bfloat16)
        self.shift_pad = (jnp.zeros((1, self.cpad), jnp.float32)
                          .at[0, :out_channels].set(shift))

    # ---------------- wrapper glue: layout + im2col packing -------------------
    def _im2col(self, x_nhwc):
        """Returns (xs, Ho_out, Wo_out); xs is (N, P, 9*Cin) bf16."""
        N, H, W, Cin = x_nhwc.shape
        s = self.stride
        xp = jnp.pad(x_nhwc, ((0, 0), (1, 1), (1, 1), (0, 0)))
        Ho = (H + 2 - 3) // s + 1
        Wo = (W + 2 - 3) // s + 1
        taps = []
        for dy in range(3):
            for dx in range(3):
                taps.append(lax.slice(
                    xp, (0, dy, dx, 0),
                    (N, dy + (Ho - 1) * s + 1, dx + (Wo - 1) * s + 1, Cin),
                    (1, s, s, 1)))
        cols = jnp.concatenate(taps, axis=-1)               # (N, Ho, Wo, 9*Cin)
        if self.pool:
            # Phase-ordered rows so the kernel pools with 4 contiguous slices.
            Hp, Wp = Ho // 2, Wo // 2
            phases = [cols[:, py::2, px::2, :].reshape(N, Hp * Wp, 9 * Cin)
                      for py in (0, 1) for px in (0, 1)]
            xs = jnp.concatenate(phases, axis=1)             # (N, 4*Hp*Wp, 9*Cin)
            return xs.astype(jnp.bfloat16), Hp, Wp
        return cols.reshape(N, Ho * Wo, 9 * Cin).astype(jnp.bfloat16), Ho, Wo

    def __call__(self, x_nchw):
        N = x_nchw.shape[0]
        x = jnp.transpose(x_nchw, (0, 2, 3, 1)).astype(jnp.float32)      # NHWC
        xs, Ho, Wo = self._im2col(x)
        y = _encoder_conv(xs, self.w_pad, self.shift_pad, self.pool)     # (N, P_out, Cpad)
        y = y[:, :, :self.out_channels].reshape(N, Ho, Wo, self.out_channels)
        return jnp.transpose(y, (0, 3, 1, 2))                            # back to NCHW

    # -------- independent pure-JAX reference (lax conv) for verification ------
    def reference(self, x_nchw):
        x = jnp.transpose(x_nchw, (0, 2, 3, 1)).astype(jnp.float32)
        w_hwio = jnp.transpose(self.w_c, (2, 3, 1, 0))                   # (3,3,Cin,Cout)
        y = lax.conv_general_dilated(
            x, w_hwio, window_strides=(self.stride, self.stride),
            padding=((1, 1), (1, 1)),
            dimension_numbers=("NHWC", "HWIO", "NHWC"))
        y = y + self.conv_bias
        y = (y - self.running_mean) / jnp.sqrt(self.running_var + _BN_EPS)
        y = y * self.gamma + self.beta
        y = jnp.maximum(y, 0.0)
        if self.pool:
            y = lax.reduce_window(y, -jnp.inf, lax.max,
                                  (1, 2, 2, 1), (1, 2, 2, 1), "VALID")
        return jnp.transpose(y, (0, 3, 1, 2))


if __name__ == "__main__":
    key = jax.random.PRNGKey(0)
    # PyTorch-style NCHW input: batch=2, channels=4, spatial=16x16.
    x = jax.random.normal(key, (2, 4, 16, 16), jnp.float32)

    configs = [
        dict(in_channels=4, out_channels=16, downsample_method=None),
        dict(in_channels=4, out_channels=16, downsample_method="conv"),
        dict(in_channels=4, out_channels=32, downsample_method="pool"),
    ]
    ok = True
    for i, cfg in enumerate(configs):
        layer = EncoderLayerPallas(**cfg, key=jax.random.fold_in(key, i + 1))
        y = jax.block_until_ready(layer(x))
        y_ref = layer.reference(x)
        # Tolerance covers the bf16 matmul operands (accumulation is f32).
        if not bool(jnp.allclose(y, y_ref, atol=3e-2, rtol=2e-2)):
            ok = False
            print("config %d mismatch: max abs diff %.3e"
                  % (i, float(jnp.max(jnp.abs(y - y_ref)))))
    if ok:
        print("KERNEL_OK")
</pallas_src>

<mosaic_0001>
module attributes {stable_mosaic.version = 11 : i64} {
  func.func @_encoder_kernel(%arg0: i32, %arg1: memref<1x256x36xbf16, #tpu.memory_space<vmem>>, %arg2: memref<36x128xbf16, #tpu.memory_space<vmem>>, %arg3: memref<1x128xf32, #tpu.memory_space<vmem>>, %arg4: memref<1x256x128xf32, #tpu.memory_space<vmem>>) attributes {dimension_semantics = [#tpu.dimension_semantics<parallel>], iteration_bounds = array<i64: 2>, scalar_prefetch = 0 : i64, scratch_operands = 0 : i64, tpu.core_type = #tpu.core_type<tc>, window_params = [{transform_indices = @transform_0, window_bounds = array<i64: 1, 256, 36>}, {pipeline_mode = #tpu.pipeline_mode<synchronous>, transform_indices = @transform_1, window_bounds = array<i64: 36, 128>}, {pipeline_mode = #tpu.pipeline_mode<synchronous>, transform_indices = @transform_2, window_bounds = array<i64: 1, 128>}, {transform_indices = @transform_3, window_bounds = array<i64: 1, 256, 128>}]} {
    %c0 = arith.constant 0 : index
    %c0_0 = arith.constant 0 : index
    %c0_1 = arith.constant 0 : index
    %0 = vector.load %arg1[%c0, %c0_0, %c0_1] : memref<1x256x36xbf16, #tpu.memory_space<vmem>>, vector<1x256x36xbf16>
    %1 = vector.shape_cast %0 : vector<1x256x36xbf16> to vector<256x36xbf16>
    %c0_2 = arith.constant 0 : index
    %c0_3 = arith.constant 0 : index
    %2 = vector.load %arg2[%c0_2, %c0_3] : memref<36x128xbf16, #tpu.memory_space<vmem>>, vector<36x128xbf16>
    %cst = arith.constant dense<0.000000e+00> : vector<256x128xf32>
    %3 = tpu.matmul %1, %2, %cst {dimension_numbers = #tpu.dot_dimension_numbers<[1], [0], [0], [1], [0, 0, 1, 1], [], []>} : vector<256x36xbf16>, vector<36x128xbf16>, vector<256x128xf32> -> vector<256x128xf32>
    %c0_4 = arith.constant 0 : index
    %c0_5 = arith.constant 0 : index
    %4 = vector.load %arg3[%c0_4, %c0_5] : memref<1x128xf32, #tpu.memory_space<vmem>>, vector<1x128xf32>
    %5 = vector.broadcast %4 : vector<1x128xf32> to vector<256x128xf32>
    %6 = arith.addf %3, %5 : vector<256x128xf32>
    %cst_6 = arith.constant 0.000000e+00 : f32
    %7 = vector.broadcast %cst_6 : f32 to vector<256x128xf32>
    %8 = arith.maximumf %6, %7 : vector<256x128xf32>
    %c0_7 = arith.constant 0 : index
    %c0_8 = arith.constant 0 : index
    %c0_9 = arith.constant 0 : index
    %9 = vector.load %arg4[%c0_7, %c0_8, %c0_9] : memref<1x256x128xf32, #tpu.memory_space<vmem>>, vector<1x256x128xf32>
    %10 = vector.shape_cast %9 : vector<1x256x128xf32> to vector<256x128xf32>
    %11 = vector.shape_cast %8 : vector<256x128xf32> to vector<1x256x128xf32>
    tpu.vector_store %arg4[%c0_7, %c0_8, %c0_9], %11 {strides = array<i32>} : memref<1x256x128xf32, #tpu.memory_space<vmem>>, vector<1x256x128xf32>,
    return
  }
  func.func @transform_0(%arg0: i32) -> (i32, i32, i32) {
    %c0_i32 = arith.constant 0 : i32
    %c0_i32_0 = arith.constant 0 : i32
    %c0_i32_1 = arith.constant 0 : i32
    return %arg0, %c0_i32, %c0_i32_0 : i32, i32, i32
  }
  func.func @transform_1(%arg0: i32) -> (i32, i32) {
    %c0_i32 = arith.constant 0 : i32
    %c0_i32_0 = arith.constant 0 : i32
    %c0_i32_1 = arith.constant 0 : i32
    return %c0_i32, %c0_i32_0 : i32, i32
  }
  func.func @transform_2(%arg0: i32) -> (i32, i32) {
    %c0_i32 = arith.constant 0 : i32
    %c0_i32_0 = arith.constant 0 : i32
    %c0_i32_1 = arith.constant 0 : i32
    return %c0_i32, %c0_i32_0 : i32, i32
  }
  func.func @transform_3(%arg0: i32) -> (i32, i32, i32) {
    %c0_i32 = arith.constant 0 : i32
    %c0_i32_0 = arith.constant 0 : i32
    %c0_i32_1 = arith.constant 0 : i32
    return %arg0, %c0_i32, %c0_i32_0 : i32, i32, i32
  }
}

</mosaic_0001>

<bundles_post_ra>
// kernel: tpu_custom_call.1
= control target key start
LH: loop header
LB: loop body
LE: loop exit
PB: predicated region body
PF: predicated region fallthrough
CT: control target
= control target key end

     0   :  { %8 = vsyncpa [#allocation3], 0  ;;  %s1147_s0 = inlined_call_operand.vmem [shape: bf16[2,256,36], index: 0, kind: input, shape index: {}]   ;;  %s1148_s1 = inlined_call_operand.vmem [shape: bf16[36,128], index: 1, kind: input, shape index: {}]   ;;  %s1149_s2 = inlined_call_operand.vmem [shape: f32[1,128], index: 2, kind: input, shape index: {}]   ;;  %s1150_s3 = inlined_call_operand.hbm [shape: f32[2,256,128], index: 3, kind: output, shape index: {}]  }
   0x1   :  { %10 = vsyncpa [#allocation3 + $0x1], 0  ;;  %s925_s12 = smov 0   ;;  %s927_s13 = smov 0  }
   0x2   :  { %s929_s14 = smov 0   ;;  %s931_s15 = smov 0  }
   0x3 LB: > { %s946_s16 = sadd.s32 4294967295, %s900_s15   ;;  %s663_s17 = sadd.s32 4294967294, %s900_s15   ;;  %s900_s15 = sphi %s931_s15, %s1156_s15   ;;  %s896_s14 = sphi %s929_s14, %s1155_s14   ;;  %s892_s13 = sphi %s927_s13, %s1154_s13   ;;  %s888_s12 = sphi %s925_s12, %s1153_s12  }
   0x4   : > { %s950_s18 = sadd.s32 1, %s900_s15   ;;  %s91_s19 = sadd.s32 1, %s896_s14 }
   0x5   : > { %s88_s20 = ssub.s32 %s900_s15, %s950_s18  ;;  %p101_p0 = scmp.ne.s32.totalorder %s896_s14, %s892_s13 }
   0x6   : > { %p89_p1 = scmp.eq.s32.totalorder %s88_s20, 0  ;;  %p102_p2 = scmp.eq.s32.totalorder %s946_s16, 1 }
   0x7   : > { %p107_p3 = scmp.ne.s32.totalorder %s892_s13, %s888_s12  ;;  %p108_p4 = scmp.eq.s32.totalorder %s663_s17, 1 }
   0x8   : > { %s961_s21 = scalar_select %p89_p1, %s896_s14, %s91_s19  }
   0x9   : > { %p963_p5 = por %p102_p2, %p101_p0  ;;  %p967_p6 = por %p108_p4, %p107_p3 }
   0xa   : > { %p666_p7 = scmp.ge.s32.totalorder %s900_s15, 1  ;;  %p140_p8 = scmp.lt.s32.totalorder %s900_s15, 3 }
   0xc   : > { %p141_p9 = pnand %p666_p7, %p140_p8 }
   0xd   : > { %v819_v0 = vld [vmem:[%s1148_s1] sm:$0xff] (!%p141_p9)   ;;  %v820_v1 = vld [vmem:[%s1148_s1 + $0x8] sm:$0xff] (!%p141_p9)   ;;  %p164_p10 = scmp.lt.s32.totalorder (!%p141_p9), %s946_s16, 1  ;;  %v821_v2 = vld [vmem:[%s1148_s1 + $0x10] ss:$0 sps:$4 sm:$0x33] (!%p141_p9)  }
   0xe   : > { %144 = sbr.rel (%p141_p9) target bundleno = 286 (0x11e), region = 32  ;;  %732 = vmatprep.subr.bf16.mxu0 (!%p141_p9), %v819_v0  ;;  %770 = vmatprep.subr.bf16.mxu1 (!%p141_p9), %v819_v0  ;;  %vm358_vm0 = vcmask (!%p141_p9), 1041408   ;;  %vm309_vm1 = vcmask (!%p141_p9), 293888   ;;  %s161_s8 = sand.u32 (!%p141_p9), 1, %s892_s13   ;;  %v1025_v20 = vld [vmem:[%s1149_s2] ss:$0 sm:$0xff] (!%p141_p9) }
   0xf   : > { %733 = vmatpush3.bf16.msra.mxu0 (!%p141_p9), %v819_v0  ;;  %773 = vmatpush3.bf16.msra.mxu1 (!%p141_p9), %v819_v0  ;;  %v360_v4 = vsel (!%p141_p9), %vm358_vm0, %v821_v2, 0  ;;  %s667_s11 = sshll.u32 (!%p141_p9), %s161_s8, 8  ;;  %s712_s19 = sshll.u32 (!%p141_p9), %s946_s16, 12 }
  0x10   : > { %734 = vmatprep.subr.bf16.mxu0 (!%p141_p9), %v820_v1  ;;  %771 = vmatprep.subr.bf16.mxu1 (!%p141_p9), %v820_v1  ;;  %s1037_s17 = scalar_lea.vmem (!%p141_p9), [#allocation2], %s667_s11  ;;  %s1094_s25 = scalar_lea.hbm (!%p141_p9), %s1150_s3, %s712_s19 }
  0x11   : > { %s601_s20 = sshll.u32 (!%p141_p9), %s1037_s17, 4  ;;  %s1106_s26 = scalar_lea.sflag (!%p141_p9), [#allocation3], %s161_s8  ;;  %s1096_s20 = int_to_ptr.vmem [resolvable:$true] %s601_s20 }
  0x12   : > { %s838_s27 = scalar_lea.vmem (!%p141_p9), %s1096_s20, 4096 }
  0x13   : > { %735 = vmatpush3.bf16.msra.mxu0 (!%p141_p9), %v820_v1  ;;  %774 = vmatpush3.bf16.msra.mxu1 (!%p141_p9), %v820_v1  ;;  %p839_p11 = scmp.ne.s32.totalorder (!%p141_p9), %s1096_s20, %s838_s27 }
  0x14   : > { %776 = vmatprep.subr.msk.bf16.mxu0 (!%p141_p9), %vm358_vm0, %v821_v2  ;;  %777 = vmatprep.subr.msk.bf16.mxu1 (!%p141_p9), %vm358_vm0, %v821_v2 }
  0x15   : > { %s165_s28 = scalar_select %p164_p10, %s946_s16, 1 }
  0x16   : > { %p840_p12 = pnand %p839_p11, %p963_p5 }
  0x17   : > { %s711_s4 = sshll.u32 %s165_s28, 7  ;;  %737 = vmatpush3.bf16.msra.mxu0 %v360_v4  ;;  %775 = vmatpush3.bf16.msra.mxu1 %v360_v4  ;;  %s902_s28 = smov [#allocation2]  }
  0x18   : > { %s987_s7 = scalar_lea.vmem %s1147_s0, %s711_s4  ;;  %p841_p13 = pneg %p840_p12 }
  0x19   : > { %v822_v3 = vld [vmem:[%s987_s7] sm:$0xff]   ;;  %v824_v6 = vld [vmem:[%s987_s7 + $0x8] sm:$0xff]   ;;  %v826_v8 = vld [vmem:[%s987_s7 + $0x10] sm:$0xff]   ;;  %s842_s29 = sshll.u32 %s902_s28, 4  ;;  %s843_s29 = int_to_ptr.vmem [resolvable:$false] %s842_s29 }
  0x1a   : > { %v823_v5 = vld [vmem:[%s987_s7 + $0x40] sm:$0xff]   ;;  %738 = vmatprep.mubr.msk.bf16.mxu0 %vm309_vm1, %v822_v3  ;;  %v825_v7 = vld [vmem:[%s987_s7 + $0x48] sm:$0xff]   ;;  %v827_v9 = vld [vmem:[%s987_s7 + $0x50] sm:$0xff]   ;;  %s844_s30 = scalar_lea.vmem %s843_s29, 8192  ;;  %p845_p0 = scmp.lt.s32.totalorder %s1096_s20, %s843_s29 }
  0x1b   : > { %754 = vmatprep.mubr.msk.bf16.mxu1 %vm309_vm1, %v823_v5  ;;  %739 = vmatmul.mubr.msk.bf16.vlgmr.msra.gmra.mrb[0].mxu0 %vm309_vm1, %v824_v6  ;;  %v828_v10 = vld [vmem:[%s987_s7 + $0x18] sm:$0xff]   ;;  %v830_v12 = vld [vmem:[%s987_s7 + $0x20] sm:$0xff]   ;;  %v832_v14 = vld [vmem:[%s987_s7 + $0x28] sm:$0xff]   ;;  %p846_p1 = scmp.lt.s32.totalorder %s844_s30, %s838_s27 }
  0x1c   : > { %755 = vmatmul.mubr.msk.bf16.vlgmr.msra.gmra.mrb[0].mxu1 %vm309_vm1, %v825_v7  ;;  %742 = vmatprep.mubr.msk.bf16.mxu0 %vm309_vm1, %v826_v8  ;;  %v829_v11 = vld [vmem:[%s987_s7 + $0x58] sm:$0xff]   ;;  %v831_v13 = vld [vmem:[%s987_s7 + $0x60] sm:$0xff]   ;;  %v833_v15 = vld [vmem:[%s987_s7 + $0x68] sm:$0xff]  }
  0x1d   : > { %758 = vmatprep.mubr.msk.bf16.mxu1 %vm309_vm1, %v827_v9  ;;  %v834_v16 = vld [vmem:[%s987_s7 + $0x30] sm:$0xff]   ;;  %v836_v18 = vld [vmem:[%s987_s7 + $0x38] sm:$0xff]   ;;  %p847_p2 = por %p846_p1, %p845_p0 }
  0x1e   : > { %v835_v17 = vld [vmem:[%s987_s7 + $0x70] sm:$0xff]   ;;  %v837_v19 = vld [vmem:[%s987_s7 + $0x78] sm:$0xff]  }
  0x1f   : > { %p848_p3 = pnand %p847_p2, %p841_p13 }
  0x23   : > { %743 = vmatmul.mubr.msk.bf16.gmra.mrb[4].mxu0 %vm309_vm1, %v828_v10 }
  0x24   : > { %759 = vmatmul.mubr.msk.bf16.gmra.mrb[4].mxu1 %vm309_vm1, %v829_v11  ;;  %746 = vmatprep.mubr.msk.bf16.mxu0 %vm309_vm1, %v830_v12 }
  0x25   : > { %762 = vmatprep.mubr.msk.bf16.mxu1 %vm309_vm1, %v831_v13 }
  0x2b   : > { %747 = vmatmul.mubr.msk.bf16.gmra.mrb[8].mxu0 %vm309_vm1, %v832_v14 }
  0x2c   : > { %763 = vmatmul.mubr.msk.bf16.gmra.mrb[8].mxu1 %vm309_vm1, %v833_v15  ;;  %750 = vmatprep.mubr.msk.bf16.mxu0 %vm309_vm1, %v834_v16 }
  0x2d   : > { %766 = vmatprep.mubr.msk.bf16.mxu1 %vm309_vm1, %v835_v17 }
  0x33   : > { %751 = vmatmul.mubr.msk.bf16.gmra.mrb[12].mxu0 %vm309_vm1, %v836_v18 }
  0x34   : > { %767 = vmatmul.mubr.msk.bf16.gmra.mrb[12].mxu1 %vm309_vm1, %v837_v19 }
  0xee   : > { %v740_v21 = vpop.f32.mrb[0].mxu0 }
  0xef   : > { %v756_v22 = vpop.f32.mrb[0].mxu1  ;;  %v405_v23 = vadd.f32 %v740_v21, %v1025_v20  ;;  %v396_v25 = vpop.f32.mrb[1].mxu0 }
  0xf0   : > { %v469_v24 = vadd.f32 %v756_v22, %v1025_v20  ;;  %v460_v26 = vpop.f32.mrb[1].mxu1  ;;  %v397_v27 = vadd.f32 %v1025_v20, %v396_v25  ;;  %v741_v29 = vpop.f32.mrb[2].mxu0 }
  0xf1   : > { %v461_v28 = vadd.f32 %v1025_v20, %v460_v26  ;;  %v757_v30 = vpop.f32.mrb[2].mxu1  ;;  %v525_v31 = vmax.f32 %v405_v23, 0.0  ;;  %v408_v33 = vadd.f32 %v741_v29, %v1025_v20  ;;  %v399_v35 = vpop.f32.mrb[3].mxu0 }
  0xf2   : > { %v541_v32 = vmax.f32 %v469_v24, 0.0  ;;  %v472_v34 = vadd.f32 %v757_v30, %v1025_v20  ;;  %v463_v36 = vpop.f32.mrb[3].mxu1  ;;  %v523_v37 = vmax.f32 %v397_v27, 0.0  ;;  %v400_v39 = vadd.f32 %v1025_v20, %v399_v35 }
  0xf3   : > { %v539_v38 = vmax.f32 %v461_v28, 0.0  ;;  %v464_v40 = vadd.f32 %v1025_v20, %v463_v36  ;;  %557 = vst [vmem:[%s1037_s17 + $0x10] sm:$0xff] %v525_v31  ;;  %v526_v41 = vmax.f32 %v408_v33, 0.0 }
  0xf4   : > { %573 = vst [vmem:[%s1037_s17 + $0x90] sm:$0xff] %v541_v32  ;;  %v542_v42 = vmax.f32 %v472_v34, 0.0  ;;  %555 = vst [vmem:[%s1037_s17] sm:$0xff] %v523_v37  ;;  %v524_v43 = vmax.f32 %v400_v39, 0.0 }
  0xf5   : > { %571 = vst [vmem:[%s1037_s17 + $0x80] sm:$0xff] %v539_v38  ;;  %v540_v44 = vmax.f32 %v464_v40, 0.0  ;;  %558 = vst [vmem:[%s1037_s17 + $0x18] sm:$0xff] %v526_v41 }
  0xf6   : > { %574 = vst [vmem:[%s1037_s17 + $0x98] sm:$0xff] %v542_v42  ;;  %556 = vst [vmem:[%s1037_s17 + $0x8] sm:$0xff] %v524_v43  ;;  %v744_v45 = vpop.f32.mrb[4].mxu0 }
  0xf7   : > { %572 = vst [vmem:[%s1037_s17 + $0x88] sm:$0xff] %v540_v44  ;;  %v760_v46 = vpop.f32.mrb[4].mxu1  ;;  %v421_v47 = vadd.f32 %v744_v45, %v1025_v20  ;;  %v412_v49 = vpop.f32.mrb[5].mxu0 }
  0xf8   : > { %v485_v48 = vadd.f32 %v760_v46, %v1025_v20  ;;  %v476_v50 = vpop.f32.mrb[5].mxu1  ;;  %v413_v51 = vadd.f32 %v1025_v20, %v412_v49  ;;  %v745_v53 = vpop.f32.mrb[6].mxu0 }
  0xf9   : > { %v477_v52 = vadd.f32 %v1025_v20, %v476_v50  ;;  %v761_v54 = vpop.f32.mrb[6].mxu1  ;;  %v529_v55 = vmax.f32 %v421_v47, 0.0  ;;  %v424_v57 = vadd.f32 %v745_v53, %v1025_v20  ;;  %v415_v59 = vpop.f32.mrb[7].mxu0 }
  0xfa   : > { %v545_v56 = vmax.f32 %v485_v48, 0.0  ;;  %v488_v58 = vadd.f32 %v761_v54, %v1025_v20  ;;  %v479_v60 = vpop.f32.mrb[7].mxu1  ;;  %v527_v61 = vmax.f32 %v413_v51, 0.0  ;;  %v416_v63 = vadd.f32 %v1025_v20, %v415_v59 }
  0xfb   : > { %v543_v62 = vmax.f32 %v477_v52, 0.0  ;;  %v480_v0 = vadd.f32 %v1025_v20, %v479_v60  ;;  %561 = vst [vmem:[%s1037_s17 + $0x30] sm:$0xff] %v529_v55  ;;  %v530_v1 = vmax.f32 %v424_v57, 0.0 }
  0xfc   : > { %577 = vst [vmem:[%s1037_s17 + $0xb0] sm:$0xff] %v545_v56  ;;  %v546_v2 = vmax.f32 %v488_v58, 0.0  ;;  %559 = vst [vmem:[%s1037_s17 + $0x20] sm:$0xff] %v527_v61  ;;  %v528_v3 = vmax.f32 %v416_v63, 0.0 }
  0xfd   : > { %575 = vst [vmem:[%s1037_s17 + $0xa0] sm:$0xff] %v543_v62  ;;  %v544_v4 = vmax.f32 %v480_v0, 0.0  ;;  %562 = vst [vmem:[%s1037_s17 + $0x38] sm:$0xff] %v530_v1 }
  0xfe   : > { %578 = vst [vmem:[%s1037_s17 + $0xb8] sm:$0xff] %v546_v2  ;;  %560 = vst [vmem:[%s1037_s17 + $0x28] sm:$0xff] %v528_v3  ;;  %v748_v5 = vpop.f32.mrb[8].mxu0 }
  0xff   : > { %576 = vst [vmem:[%s1037_s17 + $0xa8] sm:$0xff] %v544_v4  ;;  %v764_v6 = vpop.f32.mrb[8].mxu1  ;;  %v437_v7 = vadd.f32 %v748_v5, %v1025_v20  ;;  %v428_v9 = vpop.f32.mrb[9].mxu0 }
 0x100   : > { %v501_v8 = vadd.f32 %v764_v6, %v1025_v20  ;;  %v492_v10 = vpop.f32.mrb[9].mxu1  ;;  %v429_v11 = vadd.f32 %v1025_v20, %v428_v9  ;;  %v749_v13 = vpop.f32.mrb[10].mxu0 }
 0x101   : > { %v493_v12 = vadd.f32 %v1025_v20, %v492_v10  ;;  %v765_v14 = vpop.f32.mrb[10].mxu1  ;;  %v533_v15 = vmax.f32 %v437_v7, 0.0  ;;  %v440_v17 = vadd.f32 %v749_v13, %v1025_v20  ;;  %v431_v19 = vpop.f32.mrb[11].mxu0 }
 0x102   : > { %v549_v16 = vmax.f32 %v501_v8, 0.0  ;;  %v504_v18 = vadd.f32 %v765_v14, %v1025_v20  ;;  %v495_v21 = vpop.f32.mrb[11].mxu1  ;;  %v531_v22 = vmax.f32 %v429_v11, 0.0  ;;  %v432_v24 = vadd.f32 %v1025_v20, %v431_v19 }
 0x103   : > { %v547_v23 = vmax.f32 %v493_v12, 0.0  ;;  %v496_v25 = vadd.f32 %v1025_v20, %v495_v21  ;;  %565 = vst [vmem:[%s1037_s17 + $0x50] sm:$0xff] %v533_v15  ;;  %v534_v26 = vmax.f32 %v440_v17, 0.0 }
 0x104   : > { %581 = vst [vmem:[%s1037_s17 + $0xd0] sm:$0xff] %v549_v16  ;;  %v550_v27 = vmax.f32 %v504_v18, 0.0  ;;  %563 = vst [vmem:[%s1037_s17 + $0x40] sm:$0xff] %v531_v22  ;;  %v532_v28 = vmax.f32 %v432_v24, 0.0 }
 0x105   : > { %579 = vst [vmem:[%s1037_s17 + $0xc0] sm:$0xff] %v547_v23  ;;  %v548_v29 = vmax.f32 %v496_v25, 0.0  ;;  %566 = vst [vmem:[%s1037_s17 + $0x58] sm:$0xff] %v534_v26 }
 0x106   : > { %582 = vst [vmem:[%s1037_s17 + $0xd8] sm:$0xff] %v550_v27  ;;  %564 = vst [vmem:[%s1037_s17 + $0x48] sm:$0xff] %v532_v28  ;;  %v752_v30 = vpop.f32.mrb[12].mxu0 }
 0x107   : > { %580 = vst [vmem:[%s1037_s17 + $0xc8] sm:$0xff] %v548_v29  ;;  %v768_v31 = vpop.f32.mrb[12].mxu1  ;;  %v453_v32 = vadd.f32 %v752_v30, %v1025_v20  ;;  %v444_v34 = vpop.f32.mrb[13].mxu0 }
 0x108   : > { %v517_v33 = vadd.f32 %v768_v31, %v1025_v20  ;;  %v508_v35 = vpop.f32.mrb[13].mxu1  ;;  %v445_v36 = vadd.f32 %v1025_v20, %v444_v34  ;;  %v753_v38 = vpop.f32.mrb[14].mxu0 }
 0x109   : > { %v509_v37 = vadd.f32 %v1025_v20, %v508_v35  ;;  %v769_v39 = vpop.f32.mrb[14].mxu1  ;;  %v537_v40 = vmax.f32 %v453_v32, 0.0  ;;  %v456_v42 = vadd.f32 %v753_v38, %v1025_v20  ;;  %v447_v44 = vpop.f32.mrb[15].mxu0 }
 0x10a   : > { %v553_v41 = vmax.f32 %v517_v33, 0.0  ;;  %v520_v43 = vadd.f32 %v769_v39, %v1025_v20  ;;  %v511_v45 = vpop.f32.mrb[15].mxu1  ;;  %v535_v46 = vmax.f32 %v445_v36, 0.0  ;;  %v448_v48 = vadd.f32 %v1025_v20, %v447_v44 }
 0x10b   : > { %v551_v47 = vmax.f32 %v509_v37, 0.0  ;;  %v512_v49 = vadd.f32 %v1025_v20, %v511_v45  ;;  %569 = vst [vmem:[%s1037_s17 + $0x70] sm:$0xff] %v537_v40  ;;  %v538_v50 = vmax.f32 %v456_v42, 0.0 }
 0x10c   : > { %585 = vst [vmem:[%s1037_s17 + $0xf0] sm:$0xff] %v553_v41  ;;  %v554_v51 = vmax.f32 %v520_v43, 0.0  ;;  %567 = vst [vmem:[%s1037_s17 + $0x60] sm:$0xff] %v535_v46  ;;  %v536_v52 = vmax.f32 %v448_v48, 0.0 }
 0x10d   : > { %583 = vst [vmem:[%s1037_s17 + $0xe0] sm:$0xff] %v551_v47  ;;  %v552_v53 = vmax.f32 %v512_v49, 0.0  ;;  %570 = vst [vmem:[%s1037_s17 + $0x78] sm:$0xff] %v538_v50 }
 0x10e   : > { %586 = vst [vmem:[%s1037_s17 + $0xf8] sm:$0xff] %v554_v51  ;;  %568 = vst [vmem:[%s1037_s17 + $0x68] sm:$0xff] %v536_v52 }
 0x10f   : > { %584 = vst [vmem:[%s1037_s17 + $0xe8] sm:$0xff] %v552_v53 }
 0x110   : > { %851 = shalt.err (!%p848_p3)
}
 0x111   : > { %s852_s4 = scalar_lea.hbm %s1094_s25, 4096  ;;  %s856_s7 = scalar_lea.hbm %s1150_s3, 8192 }
 0x112   : > { %p853_p4 = scmp.ne.s32.totalorder %s1094_s25, %s852_s4  ;;  %p857_p9 = scmp.lt.u32.totalorder %s1094_s25, %s1150_s3 }
 0x113   : > { %p858_p10 = scmp.lt.u32.totalorder %s856_s7, %s852_s4  ;;  %p860_p12 = scmp.lt.u32.totalorder %s852_s4, %s1094_s25 }
 0x114   : > { %p854_p7 = pnand %p853_p4, %p963_p5 }
 0x115   : > { %p859_p11 = por %p858_p10, %p857_p9 }
 0x116   : > { %p855_p8 = pneg %p854_p7 }
 0x117   : > { %p861_p13 = por %p860_p12, %p859_p11 }
 0x119   : > { %p862_p0 = pnand %p861_p13, %p855_p8 }
 0x11b   : > { %865 = shalt.err (!%p862_p0)
}
 0x11c   : > { %s903_s10 = smov 128   ;;  %s904_s11 = smov 8  }
 0x11d   : > { %778 = dma.vmem_to_hbm [thread:$0]  (%p963_p5), %s1096_s20, 4096, %s1094_s25, %s1106_s26, %s903_s10, %s903_s10, %s904_s11  }
 0x11e PF: > { %p784_p1 = scmp.ge.s32.totalorder %s900_s15, 2  ;;  %s616_s17 = sand.u32 1, %s888_s12  }
 0x11f   : > { %s617_s19 = scalar_lea.sflag [#allocation3], %s616_s17 }
 0x120   : > { %p781_p2 = pnand %p784_p1, %p967_p6 }
 0x122   : > { %883 = dma.done.wait (!%p781_p2), %s617_s19, 4096  }
 0x123   : > { %885 = vsyncadd (!%p781_p2), %s617_s19, 4294963200  ;;  %p13_p3 = scmp.ge.s32.totalorder %s950_s18, 4   ;;  %s1153_s12 = smov %s892_s13 }
 0x124   : > { %s1154_s13 = smov %s896_s14  ;;  %s1155_s14 = smov %s961_s21 }
 0x125   : > { %s1156_s15 = smov %s950_s18  ;;  %15 = sbr.rel (!%p13_p3) target bundleno = 3 (0x3), region = 67 }
 0x12c   :  { %622 = vsyncpa [#allocation3], 1 }
 0x12d   :  { %624 = vsyncpa [#allocation3 + $0x1], 1 }

</bundles_post_ra>
